<compile_context>
chip_gen: v7x
topology: tpu7x:2x2x1
jax: 0.10.0
libtpu: 0.0.40
codegen_flags: <defaults>
</compile_context>

<pallas_src>
import numpy as np
import jax
import jax.numpy as jnp
from jax.experimental import pallas as pl
from jax.experimental.pallas import tpu as pltpu


# ---------------------------------------------------------------------------
# One-time weight construction (host side).  Matches torch.sparse.FloatTensor
# semantics: duplicate (pre, post) coordinates accumulate.
# TODO(synk): the np.random.permutation / scatter-add setup is deterministic
# host glue, not part of the kernel hot path.
# ---------------------------------------------------------------------------
def build_one_to_n_weight(N, dim_input, dim_output, weight=100.0, seed=0):
    rng = np.random.default_rng(seed)
    pre = np.arange(dim_input * N) % dim_input
    post = rng.permutation(max(dim_input, dim_output) * N)[: dim_input * N] % dim_output
    W = np.zeros((dim_input, dim_output), dtype=np.float32)
    np.add.at(W, (pre, post), np.float32(weight))  # duplicates accumulate
    return W


def _round_up(x, m):
    return (x + m - 1) // m * m


def _pad2d(a, rows, cols):
    r, c = a.shape
    if r == rows and c == cols:
        return a
    return jnp.pad(a, ((0, rows - r), (0, cols - c)))


# ---------------------------------------------------------------------------
# Kernels
# ---------------------------------------------------------------------------
def _single_block_kernel(x_ref, w_ref, o_ref):
    # Whole (padded) problem in one MXU matmul; bf16 operands, f32 accumulation.
    o_ref[...] = jnp.dot(
        x_ref[...], w_ref[...], preferred_element_type=jnp.float32
    ).astype(o_ref.dtype)


def _tiled_kernel(x_ref, w_ref, o_ref, acc_ref):
    # Standard output-stationary tiled GEMM with K as the innermost grid axis.
    @pl.when(pl.program_id(2) == 0)
    def _():
        acc_ref[...] = jnp.zeros_like(acc_ref)

    acc_ref[...] += jnp.dot(
        x_ref[...], w_ref[...], preferred_element_type=jnp.float32
    )

    @pl.when(pl.program_id(2) == pl.num_programs(2) - 1)
    def _():
        o_ref[...] = acc_ref[...].astype(o_ref.dtype)


# ---------------------------------------------------------------------------
# Forward wrapper
# ---------------------------------------------------------------------------
# Below this padded-footprint (x + W in bf16 plus f32 output), a single
# gridless block is strictly better than any pipelined tiling.
_SINGLE_BLOCK_VMEM_BYTES = 4 * 1024 * 1024


def one_to_n_forward(x, W, *, tm=256, tn=256, tk=256, force_tiled=False):
    """x: (batch, dim_input) f32, W: (dim_input, dim_output) f32 -> (batch, dim_output) f32."""
    batch, dim_input = x.shape
    dim_output = W.shape[1]

    # Lane/sublane-friendly padding (zero padding is mathematically neutral:
    # extra K columns multiply zero rows of W; extra M rows / N cols are sliced).
    m_small = _round_up(batch, 8)
    k_small = _round_up(dim_input, 128)
    n_small = _round_up(dim_output, 128)
    footprint = 2 * (m_small * k_small + k_small * n_small) + 4 * m_small * n_small

    if (not force_tiled) and footprint <= _SINGLE_BLOCK_VMEM_BYTES:
        # ---- Small path: no grid, whole-array VMEM residency. ----
        xb = _pad2d(x, m_small, k_small).astype(jnp.bfloat16)
        wb = _pad2d(W, k_small, n_small).astype(jnp.bfloat16)
        out = pl.pallas_call(
            _single_block_kernel,
            out_shape=jax.ShapeDtypeStruct((m_small, n_small), jnp.float32),
            in_specs=[
                pl.BlockSpec(memory_space=pltpu.MemorySpace.VMEM),
                pl.BlockSpec(memory_space=pltpu.MemorySpace.VMEM),
            ],
            out_specs=pl.BlockSpec(memory_space=pltpu.MemorySpace.VMEM),
        )(xb, wb)
        return out[:batch, :dim_output]

    # ---- Large path: tiled GEMM with f32 accumulator scratch. ----
    # NOTE(v7x): keep (2 inputs x 2 buffers x tile) + accumulator well under the
    # 64 MiB VMEM budget; the defaults tm=tn=tk=256 use ~1.3 MiB and are safe on
    # every generation.  Raise vmem_limit_bytes only if you grow the tiles.
    mp = _round_up(batch, tm)
    kp = _round_up(dim_input, tk)
    np_ = _round_up(dim_output, tn)
    xb = _pad2d(x, mp, kp).astype(jnp.bfloat16)
    wb = _pad2d(W, kp, np_).astype(jnp.bfloat16)
    grid = (mp // tm, np_ // tn, kp // tk)

    out = pl.pallas_call(
        _tiled_kernel,
        out_shape=jax.ShapeDtypeStruct((mp, np_), jnp.float32),
        grid_spec=pltpu.PrefetchScalarGridSpec(
            num_scalar_prefetch=0,
            grid=grid,
            in_specs=[
                pl.BlockSpec((tm, tk), lambda i, j, k: (i, k)),
                # W tile index is invariant in the M (batch) grid axis: the
                # fixed weight is not re-streamed when only the batch block
                # changes.
                pl.BlockSpec((tk, tn), lambda i, j, k: (k, j)),
            ],
            out_specs=pl.BlockSpec((tm, tn), lambda i, j, k: (i, j)),
            scratch_shapes=[pltpu.VMEM((tm, tn), jnp.float32)],
        ),
        compiler_params=pltpu.CompilerParams(
            # M parallel -> v7x's two TensorCores split the batch; K is the
            # reduction axis (output-resident accumulator) -> arbitrary.
            dimension_semantics=("parallel", "parallel", "arbitrary"),
        ),
    )(xb, wb)
    return out[:batch, :dim_output]


# ---------------------------------------------------------------------------
# Test
# ---------------------------------------------------------------------------
if __name__ == "__main__":
    # --- Small-shape test (the module's typical toy sizes): gridless path. ---
    N = 3
    dim_input = 16
    dim_output = 32
    batch = 8
    weight = 100.0

    W_np = build_one_to_n_weight(N, dim_input, dim_output, weight=weight, seed=0)
    W = jnp.asarray(W_np)

    key = jax.random.PRNGKey(0)
    x = jax.random.normal(key, (batch, dim_input), dtype=jnp.float32)

    out = one_to_n_forward(x, W)
    out = jax.block_until_ready(out)
    assert out.shape == (batch, dim_output)

    # Reference: same bf16-rounded x (W is exact in bf16), f32 accumulation.
    x_bf = np.asarray(x.astype(jnp.bfloat16).astype(jnp.float32))
    ref = x_bf @ W_np
    np.testing.assert_allclose(np.asarray(out), ref, rtol=1e-4, atol=1e-2)

    # --- Larger-shape test: tiled GEMM path (forced). ---
    N2, di2, do2, b2 = 3, 256, 384, 256
    W2_np = build_one_to_n_weight(N2, di2, do2, weight=weight, seed=1)
    W2 = jnp.asarray(W2_np)
    x2 = jax.random.normal(jax.random.PRNGKey(1), (b2, di2), dtype=jnp.float32)

    out2 = one_to_n_forward(x2, W2, tm=128, tn=128, tk=128, force_tiled=True)
    out2 = jax.block_until_ready(out2)
    assert out2.shape == (b2, do2)

    x2_bf = np.asarray(x2.astype(jnp.bfloat16).astype(jnp.float32))
    ref2 = x2_bf @ W2_np
    np.testing.assert_allclose(np.asarray(out2), ref2, rtol=1e-4, atol=1e-1)

    print("KERNEL_OK")
</pallas_src>

<mosaic_0001>
module attributes {stable_mosaic.version = 11 : i64} {
  func.func @_single_block_kernel(%arg0: memref<8x128xbf16, #tpu.memory_space<vmem>>, %arg1: memref<128x128xbf16, #tpu.memory_space<vmem>>, %arg2: memref<8x128xf32, #tpu.memory_space<vmem>>) attributes {dimension_semantics = [], scalar_prefetch = 0 : i64, scratch_operands = 0 : i64, tpu.core_type = #tpu.core_type<tc>} {
    %c0 = arith.constant 0 : index
    %c0_0 = arith.constant 0 : index
    %0 = vector.load %arg0[%c0, %c0_0] : memref<8x128xbf16, #tpu.memory_space<vmem>>, vector<8x128xbf16>
    %c0_1 = arith.constant 0 : index
    %c0_2 = arith.constant 0 : index
    %1 = vector.load %arg1[%c0_1, %c0_2] : memref<128x128xbf16, #tpu.memory_space<vmem>>, vector<128x128xbf16>
    %cst = arith.constant dense<0.000000e+00> : vector<8x128xf32>
    %2 = tpu.matmul %0, %1, %cst {dimension_numbers = #tpu.dot_dimension_numbers<[1], [0], [0], [1], [0, 0, 1, 1], [], []>} : vector<8x128xbf16>, vector<128x128xbf16>, vector<8x128xf32> -> vector<8x128xf32>
    %c0_3 = arith.constant 0 : index
    %c0_4 = arith.constant 0 : index
    %3 = vector.load %arg2[%c0_3, %c0_4] : memref<8x128xf32, #tpu.memory_space<vmem>>, vector<8x128xf32>
    tpu.vector_store %arg2[%c0_3, %c0_4], %2 {strides = array<i32>} : memref<8x128xf32, #tpu.memory_space<vmem>>, vector<8x128xf32>,
    return
  }
}

</mosaic_0001>

<bundles_post_ra>
// kernel: tpu_custom_call.1
= control target key start
LH: loop header
LB: loop body
LE: loop exit
PB: predicated region body
PF: predicated region fallthrough
CT: control target
= control target key end

     0   :  { %7 = vsyncpa [#allocation3], 0  ;;  %s350_s0 = inlined_call_operand.hbm [shape: bf16[8,128], index: 0, kind: input, shape index: {}]   ;;  %s351_s1 = inlined_call_operand.hbm [shape: bf16[128,128], index: 1, kind: input, shape index: {}]   ;;  %s352_s2 = inlined_call_operand.hbm [shape: f32[8,128], index: 2, kind: output, shape index: {}]  }
   0x1   :  { %8 = vsyncpa [#allocation6], 0 }
   0x2   :  { %9 = vsyncpa [#allocation4], 0  ;;  %s285_s9 = smov [#allocation2]   ;;  %s286_s11 = smov [#allocation5]  }
   0x3   :  { %s16_s10 = sshll.u32 %s285_s9, 4  ;;  %s25_s12 = sshll.u32 %s286_s11, 4  ;;  %s17_s10 = int_to_ptr.vmem [resolvable:$true] %s16_s10  ;;  %s307_s12 = int_to_ptr.vmem [resolvable:$true] %s25_s12 }
   0x4   :  { %s213_s15 = scalar_lea.hbm %s350_s0, 64 }
   0x5   :  { %p214_p0 = scmp.ne.s32.totalorder %s350_s0, %s213_s15  ;;  %p217_p1 = scmp.lt.u32.totalorder %s213_s15, %s350_s0 }
   0x7   :  { %p219_p2 = pnand %p217_p1, %p214_p0 }
   0x9   :  { %222 = shalt.err (!%p219_p2)
}
   0xa   :  { %s223_s20 = scalar_lea.vmem %s17_s10, 64  ;;  %p228_p4 = scmp.lt.s32.totalorder %s17_s10, %s17_s10 }
   0xb   :  { %p224_p3 = scmp.ne.s32.totalorder %s17_s10, %s223_s20  ;;  %p229_p5 = scmp.lt.s32.totalorder %s223_s20, %s223_s20 }
   0xd   :  { %p230_p6 = por %p229_p5, %p228_p4 }
   0xf   :  { %p231_p7 = pnand %p230_p6, %p224_p3 }
  0x11   :  { %234 = shalt.err (!%p231_p7)
}
  0x12   :  { %19 = dma.hbm_to_vmem [thread:$0]  %s350_s0, 64, %s17_s10, [#allocation3]  }
  0x13   :  { %s235_s25 = scalar_lea.hbm %s351_s1, 1024 }
  0x14   :  { %p236_p8 = scmp.ne.s32.totalorder %s351_s1, %s235_s25  ;;  %p239_p9 = scmp.lt.u32.totalorder %s235_s25, %s351_s1 }
  0x16   :  { %p241_p10 = pnand %p239_p9, %p236_p8 }
  0x18   :  { %244 = shalt.err (!%p241_p10)
}
  0x19   :  { %s245_s30 = scalar_lea.vmem %s307_s12, 1024  ;;  %p250_p12 = scmp.lt.s32.totalorder %s307_s12, %s307_s12 }
  0x1a   :  { %p246_p11 = scmp.ne.s32.totalorder %s307_s12, %s245_s30  ;;  %p251_p13 = scmp.lt.s32.totalorder %s245_s30, %s245_s30 }
  0x1c   :  { %p252_p0 = por %p251_p13, %p250_p12 }
  0x1e   :  { %p253_p1 = pnand %p252_p0, %p246_p11 }
  0x20   :  { %256 = shalt.err (!%p253_p1)
}
  0x21   :  { %s287_s0 = smov 64   ;;  %s288_s3 = smov 4  }
  0x22   :  { %31 = dma.hbm_to_vmem [thread:$0]  %s351_s1, 1024, %s307_s12, [#allocation6], %s287_s0, %s287_s0, %s288_s3  }
  0x23   :  { %279 = dma.done.wait [#allocation3], 64  }
  0x24   :  { %280 = vsyncadd [#allocation3], 4294967232 }
  0x25   :  { %281 = dma.done.wait [#allocation6], 1024  }
  0x26   :  { %282 = vsyncadd [#allocation6], 4294966272  ;;  %v289_v0 = vmov 0.0   ;;  %vm290_vm0 = vmmov 0   ;;  %v205_v1 = vld [vmem:[#allocation5] sm:$0xff]   ;;  %v206_v2 = vld [vmem:[#allocation5 + $0x8] sm:$0xff]  }
  0x27   :  { %178 = vmatprep.subr.bf16.mxu0 %v289_v0  ;;  %194 = vmatprep.mubr.msk.bf16.mxu0 %vm290_vm0, %v289_v0  ;;  %v207_v3 = vld [vmem:[#allocation5 + $0x10] sm:$0xff]   ;;  %v208_v4 = vld [vmem:[#allocation5 + $0x18] sm:$0xff]   ;;  %v209_v5 = vld [vmem:[#allocation5 + $0x20] sm:$0xff]   ;;  %s291_s1 = smov [#allocation7]  }
  0x28   :  { %179 = vmatpush3.bf16.msra.mxu0 %v205_v1  ;;  %v210_v6 = vld [vmem:[#allocation5 + $0x28] sm:$0xff]   ;;  %v211_v7 = vld [vmem:[#allocation5 + $0x30] sm:$0xff]   ;;  %v212_v8 = vld [vmem:[#allocation5 + $0x38] sm:$0xff]   ;;  %s151_s6 = sshll.u32 %s291_s1, 4  ;;  %s152_s6 = int_to_ptr.vmem [resolvable:$true] %s151_s6 }
  0x29   :  { %180 = vmatprep.subr.bf16.mxu0 %v289_v0  ;;  %v39_v9 = vld [vmem:[#allocation2] sm:$0xf]  ;;  %s257_s7 = scalar_lea.vmem %s152_s6, 128  ;;  %p262_p3 = scmp.lt.s32.totalorder %s152_s6, %s152_s6 }
  0x2a   :  { %p258_p2 = scmp.ne.s32.totalorder %s152_s6, %s257_s7  ;;  %p263_p4 = scmp.lt.s32.totalorder %s257_s7, %s257_s7 }
  0x2c   :  { %181 = vmatpush3.bf16.msra.mxu0 %v206_v2  ;;  %p264_p5 = por %p263_p4, %p262_p3 }
  0x2d   :  { %182 = vmatprep.subr.bf16.mxu0 %v289_v0 }
  0x2e   :  { %p265_p6 = pnand %p264_p5, %p258_p2 }
  0x30   :  { %183 = vmatpush3.bf16.msra.mxu0 %v207_v3 }
  0x31   :  { %184 = vmatprep.subr.bf16.mxu0 %v289_v0 }
  0x34   :  { %185 = vmatpush3.bf16.msra.mxu0 %v208_v4 }
  0x35   :  { %186 = vmatprep.subr.bf16.mxu0 %v289_v0 }
  0x38   :  { %187 = vmatpush3.bf16.msra.mxu0 %v209_v5 }
  0x39   :  { %188 = vmatprep.subr.bf16.mxu0 %v289_v0 }
  0x3c   :  { %189 = vmatpush3.bf16.msra.mxu0 %v210_v6 }
  0x3d   :  { %190 = vmatprep.subr.bf16.mxu0 %v289_v0 }
  0x40   :  { %191 = vmatpush3.bf16.msra.mxu0 %v211_v7 }
  0x41   :  { %192 = vmatprep.subr.bf16.mxu0 %v289_v0 }
  0x44   :  { %193 = vmatpush3.bf16.msra.mxu0 %v212_v8 }
  0x47   :  { %195 = vmatmul.mubr.bf16.vlgmr.msra.gmra.mrb[0].mxu0 %v39_v9 }
 0x11a   :  { %v138_v10 = vpop.f32.mrb[0].mxu0 }
 0x11b   :  { %144 = vst [vmem:[#allocation7] sm:$0xff] %v138_v10  ;;  %v196_v11 = vpop.f32.mrb[1].mxu0 }
 0x11c   :  { %v141_v12 = vpop.f32.mrb[2].mxu0 }
 0x11d   :  { %268 = shalt.err (!%p265_p6)
}
 0x11e   :  { %s269_s10 = scalar_lea.hbm %s352_s2, 128 }
 0x11f   :  { %p270_p7 = scmp.ne.s32.totalorder %s352_s2, %s269_s10  ;;  %p273_p8 = scmp.lt.u32.totalorder %s269_s10, %s352_s2 }
 0x121   :  { %p275_p9 = pnand %p273_p8, %p270_p7 }
 0x123   :  { %278 = shalt.err (!%p275_p9)
}
 0x124   :  { %154 = dma.vmem_to_hbm [thread:$0]  %s152_s6, 128, %s352_s2, [#allocation4]   ;;  %v197_v13 = vpop.f32.mrb[3].mxu0 }
 0x125   :  { %283 = dma.done.wait [#allocation4], 128  }
 0x126   :  { %284 = vsyncadd [#allocation4], 4294967168 }
 0x127   :  { %158 = vsyncpa [#allocation3], 1 }
 0x128   :  { %159 = vsyncpa [#allocation6], 1 }
 0x129   :  { %160 = vsyncpa [#allocation4], 1 }

</bundles_post_ra>
